<compile_context>
chip_gen: v6e
topology: v6e:2x2x1
jax: 0.10.0
libtpu: 0.0.40
codegen_flags: <defaults>
</compile_context>

<pallas_src>
import functools
import math

import jax
import jax.numpy as jnp
from jax.experimental import pallas as pl
from jax.experimental.pallas import tpu as pltpu

HEADS = 4
CH = 256          # out_channels per head (== hidden size)
OUT_DIM = 201 * 4
_NEG = -1e30      # mask value folded into the dense score bias


def _round_up(x, m):
    return ((x + m - 1) // m) * m


def _pick_tile(dim, prefs):
    """Largest preferred tile that divides `dim`; falls back to the full dim
    (always a legal block shape)."""
    if dim <= prefs[0]:
        return dim
    for t in prefs:
        if dim % t == 0:
            return t
    return dim


# ----------------------- tiled linear (matmul + bias + leaky relu) ------------------

def _linear_kernel(*refs, act, has_bias):
    if has_bias:
        x_ref, w_ref, b_ref, o_ref, acc_ref = refs
    else:
        x_ref, w_ref, o_ref, acc_ref = refs
    k = pl.program_id(2)

    @pl.when(k == 0)
    def _():
        acc_ref[...] = jnp.zeros_like(acc_ref)

    acc_ref[...] += jnp.dot(x_ref[...], w_ref[...],
                            preferred_element_type=jnp.float32)

    @pl.when(k == pl.num_programs(2) - 1)
    def _():
        y = acc_ref[...]
        if has_bias:
            y = y + b_ref[...]
        if act:
            y = jnp.where(y > 0, y, 0.01 * y)          # LeakyReLU(0.01)
        o_ref[...] = y.astype(o_ref.dtype)


def pallas_linear(x, w, b=None, act=False, out_dtype=jnp.float32):
    """y = leaky_relu?(x @ w + b): bf16 MXU operands, f32 accumulation, M/N/K tiled.

    Rows are padded to a multiple of 8 (small M) / 128 (large M) so the MXU
    always sees full tiles; the padding is sliced off on return."""
    M, K = x.shape
    Kw, Nout = w.shape
    assert K == Kw

    if M >= 128:
        Mp = _round_up(M, 128)
        tm = 256 if Mp % 256 == 0 else 128
    else:
        Mp = _round_up(M, 8)
        tm = Mp
    tn = _pick_tile(Nout, (512, 256, 128))
    tk = _pick_tile(K, (512, 256, 128))
    grid = (Mp // tm, Nout // tn, K // tk)

    xb = x.astype(jnp.bfloat16)             # no-op when x is already bf16
    if Mp != M:
        xb = jnp.pad(xb, ((0, Mp - M), (0, 0)))

    args = [xb, w.astype(jnp.bfloat16)]     # weights are pre-cast bf16 (no-op)
    in_specs = [
        pl.BlockSpec((tm, tk), lambda i, j, k: (i, k)),
        pl.BlockSpec((tk, tn), lambda i, j, k: (k, j)),
    ]
    has_bias = b is not None
    if has_bias:
        args.append(b.reshape(1, Nout).astype(jnp.float32))
        in_specs.append(pl.BlockSpec((1, tn), lambda i, j, k: (0, j)))

    kern = functools.partial(_linear_kernel, act=act, has_bias=has_bias)
    out = pl.pallas_call(
        kern,
        grid=grid,
        in_specs=in_specs,
        out_specs=pl.BlockSpec((tm, tn), lambda i, j, k: (i, j)),
        out_shape=jax.ShapeDtypeStruct((Mp, Nout), out_dtype),
        scratch_shapes=[pltpu.VMEM((tm, tn), jnp.float32)],
        compiler_params=pltpu.CompilerParams(
            dimension_semantics=("parallel", "parallel", "arbitrary")),
    )(*args)
    return out[:M] if Mp != M else out


# ----------------------- TransformerConv (dense masked graph attention) ------------

def _attn_kernel(q_ref, k_ref, v_ref, sb_ref, o_ref, a_ref):
    # scores = (q / sqrt(C)) @ k^T + per-edge q.e bias (scale already folded into q);
    # the adjacency mask is folded into sb (non-edges carry -1e30).
    scores = jax.lax.dot_general(
        q_ref[...], k_ref[...], (((1,), (1,)), ((), ())),
        preferred_element_type=jnp.float32)                      # (td, N)
    scores = scores + sb_ref[0].astype(jnp.float32)

    mx = jnp.max(scores, axis=-1, keepdims=True)                 # (td, 1)
    p = jnp.exp(scores - mx)                                     # exactly 0 for non-edges
    denom = jnp.maximum(jnp.sum(p, axis=-1, keepdims=True), jnp.float32(1e-20))
    valid = (mx > jnp.float32(-1e20)).astype(jnp.float32)        # rows w/o in-edges -> 0
    alpha = p * (valid / denom)                                  # exact normalization

    a_ref[0] = alpha.astype(a_ref.dtype)                         # bf16 alpha stream
    # v columns were pre-scaled by 1/heads, so the head-sum in glue == head-mean.
    o_ref[0] = jnp.dot(alpha.astype(v_ref.dtype), v_ref[...],
                       preferred_element_type=jnp.float32)       # (td, C)


def pallas_graph_attention(qkvs, sbias, heads=HEADS, ch=CH):
    """Dense masked multi-head graph attention.

    qkvs : (N, (3*heads+1)*ch) bf16, column layout [q | k | v | skip];
           q pre-scaled by 1/sqrt(ch), v pre-scaled by 1/heads.
    sbias: (heads, N, N) bf16; edges hold the q.e score correction, non-edges -1e30.
    Returns (per-head out (heads, N, ch) f32, alpha (heads, N, N) bf16).
    """
    N = qkvs.shape[0]
    td = _pick_tile(N, (128, 64, 32, 16, 8))   # <=128 bounds f32 temps / vregs
    grid = (heads, N // td)                    # head outer -> k/v stay VMEM-resident

    # Explicit VMEM budget (k/v slabs + bias/alpha streams + f32 temps), capped
    # at 64 MiB so it also fits v7x.
    est = (8 * N * ch              # k + v bf16, double-buffered
           + 16 * td * N           # sbias + alpha bf16, double-buffered
           + 16 * td * N           # in-kernel f32 temporaries (scores / p)
           + 16 * td * ch)         # q block + per-head out block
    vmem_limit = int(min(max(2 * est, 32 * 1024 * 1024), 64 * 1024 * 1024))

    return pl.pallas_call(
        _attn_kernel,
        grid=grid,
        in_specs=[
            pl.BlockSpec((td, ch), lambda h, i: (i, h)),                  # q (head h)
            pl.BlockSpec((N, ch), lambda h, i: (0, heads + h)),           # k (resident per head)
            pl.BlockSpec((N, ch), lambda h, i: (0, 2 * heads + h)),       # v (resident per head)
            pl.BlockSpec((1, td, N), lambda h, i: (h, i, 0)),             # score bias (+mask), bf16
        ],
        out_specs=(
            pl.BlockSpec((1, td, ch), lambda h, i: (h, i, 0)),            # per-head partial out
            pl.BlockSpec((1, td, N), lambda h, i: (h, i, 0)),             # alpha, bf16
        ),
        out_shape=(jax.ShapeDtypeStruct((heads, N, ch), jnp.float32),
                   jax.ShapeDtypeStruct((heads, N, N), jnp.bfloat16)),
        compiler_params=pltpu.CompilerParams(
            dimension_semantics=("parallel", "parallel"),
            vmem_limit_bytes=vmem_limit),
    )(qkvs, qkvs, qkvs, sbias)


# ----------------------- global mean / max / add pooling ---------------------------

def _pool_kernel(x_ref, oh_ref, mean_ref, max_ref, sum_ref):
    x = x_ref[...]                                 # (N, C) f32, VMEM-resident
    oh = oh_ref[0]                                 # (N, 1) membership of this graph
    s = jnp.sum(x * oh, axis=0, keepdims=True)     # (1, C) sum pool
    cnt = jnp.maximum(jnp.sum(oh), jnp.float32(1.0))
    sum_ref[0] = s
    mean_ref[0] = s / cnt
    max_ref[0] = jnp.max(jnp.where(oh > 0.5, x, jnp.float32(-3.0e38)),
                         axis=0, keepdims=True)


def pallas_pool(x, onehot):
    """Per-graph mean/max/sum pooling: grid over graphs, no (B, N, C) broadcast."""
    B, N = onehot.shape
    C = x.shape[1]
    oh3 = onehot.reshape(B, N, 1).astype(jnp.float32)
    outs = pl.pallas_call(
        _pool_kernel,
        grid=(B,),
        in_specs=[
            pl.BlockSpec((N, C), lambda b: (0, 0)),         # x stays resident across graphs
            pl.BlockSpec((1, N, 1), lambda b: (b, 0, 0)),   # this graph's membership column
        ],
        out_specs=(pl.BlockSpec((1, 1, C), lambda b: (b, 0, 0)),
                   pl.BlockSpec((1, 1, C), lambda b: (b, 0, 0)),
                   pl.BlockSpec((1, 1, C), lambda b: (b, 0, 0))),
        out_shape=tuple(jax.ShapeDtypeStruct((B, 1, C), jnp.float32) for _ in range(3)),
        compiler_params=pltpu.CompilerParams(dimension_semantics=("parallel",)),
    )(x.astype(jnp.float32), oh3)
    mean_p, max_p, sum_p = (o.reshape(B, C) for o in outs)
    return mean_p, max_p, sum_p


# ----------------------- parameters (inference-ready: bf16 + fused) -----------------

def init_params(key):
    keys = iter(jax.random.split(key, 64))

    def kaiming(fi, fo):
        return (math.sqrt(2.0 / fo) *
                jax.random.normal(next(keys), (fi, fo))).astype(jnp.float32)

    p = {}
    p["node_emb"] = jax.random.normal(next(keys), (118, 256), jnp.float32)

    # Matmul weights are stored pre-cast to bf16 (MXU operand dtype); biases stay f32.
    p["edge_w1"], p["edge_b1"] = kaiming(14, 128).astype(jnp.bfloat16), jnp.zeros((128,), jnp.float32)
    p["edge_w2"], p["edge_b2"] = kaiming(128, 256).astype(jnp.bfloat16), jnp.zeros((256,), jnp.float32)
    p["fce_w1"], p["fce_b1"] = kaiming(201, 256).astype(jnp.bfloat16), jnp.zeros((256,), jnp.float32)
    p["fce_w2"], p["fce_b2"] = kaiming(256, 128).astype(jnp.bfloat16), jnp.zeros((128,), jnp.float32)
    p["fc_w1"], p["fc_b1"] = kaiming(256 * 3 + 128, 1024).astype(jnp.bfloat16), jnp.zeros((1024,), jnp.float32)
    p["fc_w2"], p["fc_b2"] = kaiming(1024, OUT_DIM).astype(jnp.bfloat16), jnp.zeros((OUT_DIM,), jnp.float32)

    # Per-layer fused q|k|v|skip weight (1/sqrt(C) folded into wq, 1/heads into wv),
    # precomputed ONCE here instead of per forward pass.
    scale = 1.0 / math.sqrt(CH)
    layers = []
    for _ in range(3):
        wq = kaiming(256, HEADS * CH)
        wk = kaiming(256, HEADS * CH)
        wv = kaiming(256, HEADS * CH)
        we = kaiming(256, HEADS * CH)
        wskip = kaiming(256, CH)            # concat=False -> Linear(256, out_channels)
        w_fused = jnp.concatenate(
            [wq * scale, wk, wv * (1.0 / HEADS), wskip], axis=1).astype(jnp.bfloat16)
        layers.append({"w_fused": w_fused, "we": we.astype(jnp.bfloat16)})
    p["layers"] = layers
    # TODO(synk): node_ln / edge_ln exist in __init__ but are unused in the reference
    # forward, so they are intentionally omitted here.
    return p


# ----------------------- full CGT forward -------------------------------------------

def cgt_forward(params, node_ids, edge_index, edge_attr, energies, batch, num_graphs):
    N = node_ids.shape[0]
    H, C = HEADS, CH

    # node embedding lookup (glue)
    x = params["node_emb"][node_ids]                                    # (N, 256) f32

    # edge embedding MLP on the sparse edge list (Pallas, bf16 intermediates)
    e = pallas_linear(edge_attr, params["edge_w1"], params["edge_b1"],
                      act=True, out_dtype=jnp.bfloat16)
    e = pallas_linear(e, params["edge_w2"], params["edge_b2"],
                      out_dtype=jnp.bfloat16)                           # (E, 256) bf16

    src, dst = edge_index[0], edge_index[1]

    for lp in params["layers"]:
        # fused q/k/v/skip projection (weights pre-fused + pre-cast at init)
        qkvs = pallas_linear(x, lp["w_fused"], out_dtype=jnp.bfloat16)  # (N, 3328) bf16

        # edge-feature projection on the SPARSE edge list (Pallas, E rows, bf16)
        ep = pallas_linear(e, lp["we"], out_dtype=jnp.bfloat16).reshape(-1, H, C)

        # per-edge q.e score correction, densified as bf16 with the adjacency mask
        # folded in (non-edges = -1e30).  Assumes no duplicate (dst, src) pairs.
        # TODO(synk): these dense scatters / gathers remain XLA glue; a
        # PrefetchScalarGridSpec edge-gather kernel would avoid materializing
        # the (H, N, N) bias / alpha tensors entirely.
        q_dst = qkvs[:, :H * C].astype(jnp.float32)[dst].reshape(-1, H, C)
        qe = jnp.sum(q_dst * ep.astype(jnp.float32), axis=-1)           # (E, H)
        sbias = jnp.full((H, N, N), _NEG, jnp.bfloat16).at[:, dst, src].set(
            qe.T.astype(jnp.bfloat16))

        out_h, alpha = pallas_graph_attention(qkvs, sbias)              # (H,N,C),(H,N,N)

        # heads were pre-scaled by 1/H inside wv -> head-sum == head-mean; add skip.
        skip = qkvs[:, 3 * H * C:].astype(jnp.float32)                  # (N, 256)
        out_v = jnp.sum(out_h, axis=0) + skip

        # sparse aggregation of alpha-weighted edge messages (glue scatter-add)
        alpha_e = alpha[:, dst, src].astype(jnp.float32).T              # (E, H)
        e_agg = jnp.zeros((N, H, C), jnp.float32).at[dst].add(
            alpha_e[:, :, None] * ep.astype(jnp.float32))               # (N, H, C)
        x = out_v + jnp.mean(e_agg, axis=1)                             # (N, 256) f32

    # graph pooling (Pallas, per-graph masked reductions)
    onehot = (batch[None, :] == jnp.arange(num_graphs)[:, None]).astype(jnp.float32)
    mean_p, max_p, sum_p = pallas_pool(x, onehot)
    crys_fea = jnp.concatenate([mean_p, max_p, sum_p], axis=-1)         # (B, 768)

    # energy MLP (Pallas)
    en = pallas_linear(energies, params["fce_w1"], params["fce_b1"],
                       act=True, out_dtype=jnp.bfloat16)
    en = pallas_linear(en, params["fce_w2"], params["fce_b2"])          # (B, 128) f32
    crys_fea = jnp.concatenate([crys_fea, en], axis=-1)                 # (B, 896)

    # head MLP (Pallas)
    h1 = pallas_linear(crys_fea, params["fc_w1"], params["fc_b1"],
                       act=True, out_dtype=jnp.bfloat16)
    out = pallas_linear(h1, params["fc_w2"], params["fc_b2"])           # (B, 804) f32
    return out.reshape(num_graphs, 4, 201)


# ----------------------- demo -------------------------------------------------------

if __name__ == "__main__":
    key = jax.random.PRNGKey(0)
    pkey, dkey = jax.random.split(key)
    params = init_params(pkey)

    N, B, EDGE_DIM = 16, 2, 14
    npg = N // B

    k_ids, k_edge, k_en = jax.random.split(dkey, 3)
    node_ids_2d = jax.random.randint(k_ids, (N, 1), 0, 118)     # mimics data.x
    node_ids = node_ids_2d[:, 0]                                # x.squeeze(1)

    # bidirectional ring within each graph (no duplicate edges, every node has in-edges)
    src_list, dst_list = [], []
    for g in range(B):
        base = g * npg
        for i in range(npg):
            a, b = base + i, base + (i + 1) % npg
            src_list += [a, b]
            dst_list += [b, a]
    edge_index = jnp.array([src_list, dst_list], dtype=jnp.int32)
    E = edge_index.shape[1]

    edge_attr = jax.random.normal(k_edge, (E, EDGE_DIM), jnp.float32)
    energies = jax.random.normal(k_en, (B, 201), jnp.float32)
    batch = jnp.repeat(jnp.arange(B, dtype=jnp.int32), npg)

    out = cgt_forward(params, node_ids, edge_index, edge_attr, energies, batch, B)
    out = jax.block_until_ready(out)
    assert out.shape == (B, 4, 201) and out.dtype == jnp.float32
    print("KERNEL_OK")
</pallas_src>

<mosaic_0001>
module attributes {stable_mosaic.version = 11 : i64} {
  func.func @_linear_kernel(%arg0: i32, %arg1: i32, %arg2: i32, %arg3: memref<32x14xbf16, #tpu.memory_space<vmem>>, %arg4: memref<14x128xbf16, #tpu.memory_space<vmem>>, %arg5: memref<1x128xf32, #tpu.memory_space<vmem>>, %arg6: memref<32x128xbf16, #tpu.memory_space<vmem>>, %arg7: memref<32x128xf32, #tpu.memory_space<vmem>>) attributes {dimension_semantics = [#tpu.dimension_semantics<parallel>, #tpu.dimension_semantics<parallel>, #tpu.dimension_semantics<arbitrary>], iteration_bounds = array<i64: 1, 1, 1>, scalar_prefetch = 0 : i64, scratch_operands = 1 : i64, tpu.core_type = #tpu.core_type<tc>, window_params = [{transform_indices = @transform_0, window_bounds = array<i64: 32, 14>}, {transform_indices = @transform_1, window_bounds = array<i64: 14, 128>}, {transform_indices = @transform_2, window_bounds = array<i64: 1, 128>}, {transform_indices = @transform_3, window_bounds = array<i64: 32, 128>}]} {
    %c0_i32 = arith.constant 0 : i32
    %0 = arith.cmpi eq, %arg2, %c0_i32 : i32
    %1 = arith.extui %0 : i1 to i32
    %c0_i32_0 = arith.constant 0 : i32
    %2 = arith.cmpi ne, %1, %c0_i32_0 : i32
    scf.if %2 {
      %cst_10 = arith.constant 0.000000e+00 : f32
      %12 = vector.broadcast %cst_10 : f32 to vector<32x128xf32>
      %c0_11 = arith.constant 0 : index
      %c0_12 = arith.constant 0 : index
      %13 = vector.load %arg7[%c0_11, %c0_12] : memref<32x128xf32, #tpu.memory_space<vmem>>, vector<32x128xf32>
      tpu.vector_store %arg7[%c0_11, %c0_12], %12 {strides = array<i32>} : memref<32x128xf32, #tpu.memory_space<vmem>>, vector<32x128xf32>,
    } else {
    }
    %c0 = arith.constant 0 : index
    %c0_1 = arith.constant 0 : index
    %3 = vector.load %arg7[%c0, %c0_1] : memref<32x128xf32, #tpu.memory_space<vmem>>, vector<32x128xf32>
    %c0_2 = arith.constant 0 : index
    %c0_3 = arith.constant 0 : index
    %4 = vector.load %arg3[%c0_2, %c0_3] : memref<32x14xbf16, #tpu.memory_space<vmem>>, vector<32x14xbf16>
    %c0_4 = arith.constant 0 : index
    %c0_5 = arith.constant 0 : index
    %5 = vector.load %arg4[%c0_4, %c0_5] : memref<14x128xbf16, #tpu.memory_space<vmem>>, vector<14x128xbf16>
    %cst = arith.constant dense<0.000000e+00> : vector<32x128xf32>
    %6 = tpu.matmul %4, %5, %cst {dimension_numbers = #tpu.dot_dimension_numbers<[1], [0], [0], [1], [0, 0, 1, 1], [], []>} : vector<32x14xbf16>, vector<14x128xbf16>, vector<32x128xf32> -> vector<32x128xf32>
    %7 = arith.addf %3, %6 : vector<32x128xf32>
    %c0_6 = arith.constant 0 : index
    %c0_7 = arith.constant 0 : index
    %8 = vector.load %arg7[%c0_6, %c0_7] : memref<32x128xf32, #tpu.memory_space<vmem>>, vector<32x128xf32>
    tpu.vector_store %arg7[%c0_6, %c0_7], %7 {strides = array<i32>} : memref<32x128xf32, #tpu.memory_space<vmem>>, vector<32x128xf32>,
    %c0_i32_8 = arith.constant 0 : i32
    %9 = arith.cmpi eq, %arg2, %c0_i32_8 : i32
    %10 = arith.extui %9 : i1 to i32
    %c0_i32_9 = arith.constant 0 : i32
    %11 = arith.cmpi ne, %10, %c0_i32_9 : i32
    scf.if %11 {
      %c0_10 = arith.constant 0 : index
      %c0_11 = arith.constant 0 : index
      %12 = vector.load %arg7[%c0_10, %c0_11] : memref<32x128xf32, #tpu.memory_space<vmem>>, vector<32x128xf32>
      %c0_12 = arith.constant 0 : index
      %c0_13 = arith.constant 0 : index
      %13 = vector.load %arg5[%c0_12, %c0_13] : memref<1x128xf32, #tpu.memory_space<vmem>>, vector<1x128xf32>
      %14 = vector.broadcast %13 : vector<1x128xf32> to vector<32x128xf32>
      %15 = arith.addf %12, %14 : vector<32x128xf32>
      %cst_14 = arith.constant 0.000000e+00 : f32
      %16 = vector.broadcast %cst_14 : f32 to vector<32x128xf32>
      %17 = arith.cmpf ogt, %15, %16 : vector<32x128xf32>
      %cst_15 = arith.constant 0.00999999977 : f32
      %18 = vector.broadcast %cst_15 : f32 to vector<32x128xf32>
      %19 = arith.mulf %18, %15 : vector<32x128xf32>
      %20 = arith.select %17, %15, %19 : vector<32x128xi1>, vector<32x128xf32>
      %21 = arith.truncf %20 : vector<32x128xf32> to vector<32x128xbf16>
      %c0_16 = arith.constant 0 : index
      %c0_17 = arith.constant 0 : index
      %22 = vector.load %arg6[%c0_16, %c0_17] : memref<32x128xbf16, #tpu.memory_space<vmem>>, vector<32x128xbf16>
      tpu.vector_store %arg6[%c0_16, %c0_17], %21 {strides = array<i32>} : memref<32x128xbf16, #tpu.memory_space<vmem>>, vector<32x128xbf16>,
    } else {
    }
    return
  }
  func.func @transform_0(%arg0: i32, %arg1: i32, %arg2: i32) -> (i32, i32) {
    %c0_i32 = arith.constant 0 : i32
    return %arg0, %arg2 : i32, i32
  }
  func.func @transform_1(%arg0: i32, %arg1: i32, %arg2: i32) -> (i32, i32) {
    %c0_i32 = arith.constant 0 : i32
    return %arg2, %arg1 : i32, i32
  }
  func.func @transform_2(%arg0: i32, %arg1: i32, %arg2: i32) -> (i32, i32) {
    %c0_i32 = arith.constant 0 : i32
    %c0_i32_0 = arith.constant 0 : i32
    return %c0_i32, %arg1 : i32, i32
  }
  func.func @transform_3(%arg0: i32, %arg1: i32, %arg2: i32) -> (i32, i32) {
    %c0_i32 = arith.constant 0 : i32
    return %arg0, %arg1 : i32, i32
  }
}

</mosaic_0001>

<bundles_post_ra>
// kernel: tpu_custom_call.1
= control target key start
LH: loop header
LB: loop body
LE: loop exit
PB: predicated region body
PF: predicated region fallthrough
CT: control target
= control target key end

     0   :  { %vm56_vm0 = vcmask 1046528   ;;  %vm49_vm1 = vcmask 113664   ;;  %s284_s0 = inlined_call_operand.vmem [shape: bf16[32,14], index: 0, kind: input, shape index: {}]   ;;  %s285_s1 = inlined_call_operand.vmem [shape: bf16[14,128], index: 1, kind: input, shape index: {}]   ;;  %s286_s2 = inlined_call_operand.vmem [shape: f32[1,128], index: 2, kind: input, shape index: {}]   ;;  %s287_s3 = inlined_call_operand.hbm [shape: bf16[32,128], index: 3, kind: output, shape index: {}]  }
   0x1   :  { %v221_v0 = vld [vmem:[%s285_s1] sm:$0x7f]   ;;  %v223_v3 = vld [vmem:[%s284_s0 + $0x8] sm:$0xff]  }
   0x2   :  { %v222_v1 = vld [vmem:[%s284_s0] sm:$0xff]   ;;  %217 = vmatprep.subr.msk.bf16.mxu0 %vm56_vm0, %v221_v0  ;;  %v58_v2 = vsel %vm56_vm0, %v221_v0, 0 }
   0x3   :  { %212 = vmatpush3.bf16.msra.mxu0 %v58_v2  ;;  %213 = vmatprep.mubr.msk.bf16.mxu0 %vm49_vm1, %v222_v1 }
   0x4   :  { %8 = vsyncpa [#allocation4], 0  ;;  %v188_v4 = vld [vmem:[%s286_s2] ss:$0 sm:$0xff]  ;;  %s246_s0 = smov [#allocation3]  }
   0x5   :  { %s172_s1 = sshll.u32 %s246_s0, 4  ;;  %s173_s1 = int_to_ptr.vmem [resolvable:$true] %s172_s1 }
   0x6   :  { %214 = vmatmul.mubr.msk.bf16.vlgmr.msra.gmra.mxu0 %vm49_vm1, %v223_v3  ;;  %s224_s2 = scalar_lea.vmem %s173_s1, 256  ;;  %p229_p1 = scmp.lt.s32.totalorder %s173_s1, %s173_s1 }
   0x7   :  { %p225_p0 = scmp.ne.s32.totalorder %s173_s1, %s224_s2  ;;  %p230_p2 = scmp.lt.s32.totalorder %s224_s2, %s224_s2 }
   0x9   :  { %p231_p3 = por %p230_p2, %p229_p1 }
   0xb   :  { %p232_p4 = pnand %p231_p3, %p225_p0 }
  0xc6   :  { %v215_v5 = vpop.f32.mrf.mxu0 }
  0xc7   :  { %v133_v6 = vadd.f32 %v215_v5, %v188_v4 }
  0xc8   :  { %v94_v7 = vpop.f32.mrf.mxu0 }
  0xc9   :  { %v131_v8 = vadd.f32 %v188_v4, %v94_v7  ;;  %v141_v10 = vmul.f32 0.01, %v133_v6  ;;  %vm137_vm2 = vcmp.gt.f32.partialorder %v133_v6, 0.0 }
  0xca   :  { %v216_v9 = vpop.f32.mrf.mxu0 }
  0xcb   :  { %v134_v11 = vadd.f32 %v216_v9, %v188_v4  ;;  %v139_v13 = vmul.f32 0.01, %v131_v8  ;;  %vm135_vm4 = vcmp.gt.f32.partialorder %v131_v8, 0.0  ;;  %v145_v16 = vsel %vm137_vm2, %v133_v6, %v141_v10 }
  0xcc   :  { %v97_v12 = vpop.f32.mrf.mxu0 }
  0xcd   :  { %vm138_vm3 = vcmp.gt.f32.partialorder %v134_v11, 0.0  ;;  %v142_v14 = vmul.f32 0.01, %v134_v11  ;;  %v132_v15 = vadd.f32 %v188_v4, %v97_v12  ;;  %v143_v20 = vsel %vm135_vm4, %v131_v8, %v139_v13 }
  0xcf   :  { %v146_v17 = vsel %vm138_vm3, %v134_v11, %v142_v14  ;;  %vm136_vm5 = vcmp.gt.f32.partialorder %v132_v15, 0.0  ;;  %v140_v18 = vmul.f32 0.01, %v132_v15 }
  0xd0   :  { %v205_v19 = vpack.c.bf16 %v146_v17, %v145_v16 }
  0xd1   :  { %v144_v21 = vsel %vm136_vm5, %v132_v15, %v140_v18 }
  0xd2   :  { %207 = vst [vmem:[#allocation3 + $0x8] sm:$0xff] %v205_v19   ;;  %v200_v22 = vpack.c.bf16 %v144_v21, %v143_v20 }
  0xd4   :  { %201 = vst [vmem:[#allocation3] sm:$0xff] %v200_v22  }
  0xd5   :  { %235 = shalt.err (!%p232_p4)
}
  0xd6   :  { %s247_s20 = smov 64   ;;  %s248_s21 = smov 4  }
  0xd7   :  { %178 = dma.vmem_to_hbm [thread:$0]  %s173_s1, 256, %s287_s3, [#allocation4], %s247_s20, %s247_s20, %s248_s21  }
  0xd8   :  { %244 = dma.done.wait [#allocation4], 256  }
  0xd9   :  { %245 = vsyncadd [#allocation4], 4294967040 }
  0xda   :  { %182 = vsyncpa [#allocation4], 1 }

</bundles_post_ra>
